<compile_context>
chip_gen: v7x
topology: tpu7x:2x2x1
jax: 0.10.0
libtpu: 0.0.40
codegen_flags: <defaults>
</compile_context>

<pallas_src>
import math

import jax
import jax.numpy as jnp
from jax.experimental import pallas as pl
from jax.experimental.pallas import tpu as pltpu


def _pe_table(T, D):
    """(T, D) float32 sinusoidal table, identical to the PyTorch `pe` buffer."""
    position = jnp.arange(T, dtype=jnp.float32)[:, None]                   # (T, 1)
    div_term = jnp.exp(
        jnp.arange(0, D, 2, dtype=jnp.float32) * (-(math.log(10000.0) / D))
    )                                                                      # (D//2,)
    angles = position * div_term                                           # (T, D//2)
    # interleave: pe[:, 0::2] = sin, pe[:, 1::2] = cos
    return jnp.stack([jnp.sin(angles), jnp.cos(angles)], axis=-1).reshape(T, D)


def _pe_broadcast_kernel(pe_ref, o_ref):
    # pe_ref: (1, L)  -- lane-dense slice of the pre-tiled flat pe table
    # o_ref : (tb, L) -- output block covering tb batch rows
    # Pure sublane-broadcast + store; no transcendentals, no lane shuffles.
    o_ref[...] = jnp.broadcast_to(pe_ref[...], o_ref.shape)


def _choose_tiles(B, flat_len, target_block_bytes):
    """Pick (tb, L) = (batch rows, lane width) of one output block.

    L is a multiple of 128 (full unmasked vst) or the full flat extent; tb is a
    multiple of 8 (sublane quantum) or the full batch.  Blocks target
    ~target_block_bytes so per-grid-step overhead (~0.35 us) is amortized while
    2*(out block) + 2*(pe block) stays inside the explicit 48 MiB VMEM limit
    (safe on v5e/v6e and under v7x's 64 MiB physical VMEM per TC).
    """
    elem = 4  # f32
    # Lane width first: as wide as the target allows assuming up to 8 batch rows.
    per_row_budget = max(128 * elem, target_block_bytes // min(B, 8))
    if flat_len * elem <= per_row_budget or flat_len <= 128:
        L = flat_len                                   # full extent: always legal
    else:
        L = max(128, (per_row_budget // elem) // 128 * 128)
    # Batch rows: fold as much of B as fits the target (multiple of 8, or all of B).
    rows_fit = max(1, target_block_bytes // (L * elem))
    if B <= rows_fit:
        tb = B
    else:
        tb = min(max(8, (rows_fit // 8) * 8), B)       # multiple of 8, or == B
    return tb, L


def positional_encoding(x, max_len=100, *, target_block_bytes=8 << 20):
    """Pallas equivalent of PositionalEncoding(embed_dim=D, max_len).forward(x).

    x: (B, T, N, D) array (values unused; only its shape matters, matching the
       PyTorch module which ignores x's contents).
    returns: (B, T, N, D) float32 positional-encoding table broadcast over B, N
             (float32 regardless of x.dtype, matching the PyTorch pe buffer).
    """
    B, T, N, D = x.shape
    assert T <= max_len, "sequence length exceeds max_len"
    assert D % 2 == 0, "embed_dim must be even (as in the PyTorch module)"

    pe = _pe_table(T, D)                                   # (T, D), built once
    flat_len = T * N * D
    # Pre-tile over N and flatten to the per-batch lane-dense layout:
    # pe_flat[0, t*N*D + n*D + d] == pe[t, d]  == out[b, t, n, d] for all b, n.
    pe_flat = jnp.tile(pe, (1, N)).reshape(1, flat_len)

    tb, L = _choose_tiles(B, flat_len, target_block_bytes)
    grid = (pl.cdiv(flat_len, L), pl.cdiv(B, tb))
    # Row-tile axis is OUTER, batch axis inner: the pe block index is constant
    # across the inner batch loop, so Pallas fetches each pe slice exactly once.

    out_flat = pl.pallas_call(
        _pe_broadcast_kernel,
        out_shape=jax.ShapeDtypeStruct((B, flat_len), jnp.float32),
        grid=grid,
        in_specs=[pl.BlockSpec((1, L), lambda r, b: (0, r))],
        out_specs=pl.BlockSpec((tb, L), lambda r, b: (b, r)),
        compiler_params=pltpu.CompilerParams(
            dimension_semantics=("parallel", "parallel"),
            vmem_limit_bytes=48 * 1024 * 1024,
        ),
        cost_estimate=pl.CostEstimate(
            flops=0,
            transcendentals=0,
            bytes_accessed=B * flat_len * 4 + flat_len * 4,
        ),
    )(pe_flat)
    # free contiguous view back to the caller-facing (B, T, N, D) layout
    return out_flat.reshape(B, T, N, D)


def _reference(x, max_len=100):
    B, T, N, D = x.shape
    position = jnp.arange(max_len, dtype=jnp.float32)[:, None]
    div_term = jnp.exp(
        jnp.arange(0, D, 2, dtype=jnp.float32) * (-(math.log(10000.0) / D))
    )
    pe = jnp.zeros((max_len, D), dtype=jnp.float32)
    pe = pe.at[:, 0::2].set(jnp.sin(position * div_term))
    pe = pe.at[:, 1::2].set(jnp.cos(position * div_term))
    return jnp.broadcast_to(pe[None, :T, None, :], (B, T, N, D))


if __name__ == "__main__":
    key = jax.random.PRNGKey(0)

    # primary small shape: per-row N*D == 128 (lane-dense already)
    B, T, N, D = 2, 8, 4, 32
    x = jax.random.normal(key, (B, T, N, D), dtype=jnp.float32)
    out = jax.block_until_ready(positional_encoding(x, max_len=100))
    ref = _reference(x, max_len=100)
    assert out.shape == x.shape
    assert out.dtype == jnp.float32
    assert jnp.allclose(out, ref, atol=1e-5, rtol=1e-5)

    # secondary shape: N*D = 48 (not a multiple of 128), bf16 input.
    # Flat layout makes the output slab 1152 lanes wide -> unmasked stores.
    B2, T2, N2, D2 = 1, 24, 3, 16
    x2 = jax.random.normal(key, (B2, T2, N2, D2), dtype=jnp.bfloat16)
    out2 = jax.block_until_ready(positional_encoding(x2, max_len=100))
    ref2 = _reference(x2, max_len=100)
    assert out2.shape == x2.shape
    assert out2.dtype == jnp.float32
    assert jnp.allclose(out2, ref2, atol=1e-5, rtol=1e-5)

    # third shape: force multi-tile grid with a non-dividing last block
    # (flat_len = 17*5*32 = 2720, L = 512 -> 6 row tiles, last one padded/masked)
    # to lock in the padded-block path flagged in the review.
    B3, T3, N3, D3 = 2, 17, 5, 32
    x3 = jax.random.normal(key, (B3, T3, N3, D3), dtype=jnp.float32)
    out3 = jax.block_until_ready(
        positional_encoding(x3, max_len=100, target_block_bytes=4096)
    )
    ref3 = _reference(x3, max_len=100)
    assert out3.shape == x3.shape
    assert jnp.allclose(out3, ref3, atol=1e-5, rtol=1e-5)

    print("KERNEL_OK")
</pallas_src>

<mosaic_0001>
module attributes {stable_mosaic.version = 11 : i64} {
  func.func @_pe_broadcast_kernel(%arg0: i32, %arg1: i32, %arg2: memref<1x1024xf32, #tpu.memory_space<vmem>>, %arg3: memref<2x1024xf32, #tpu.memory_space<vmem>>) attributes {dimension_semantics = [#tpu.dimension_semantics<parallel>, #tpu.dimension_semantics<parallel>], iteration_bounds = array<i64: 1, 1>, scalar_prefetch = 0 : i64, scratch_operands = 0 : i64, tpu.core_type = #tpu.core_type<tc>, window_params = [{transform_indices = @transform_0, window_bounds = array<i64: 1, 1024>}, {transform_indices = @transform_1, window_bounds = array<i64: 2, 1024>}]} {
    %c0 = arith.constant 0 : index
    %c0_0 = arith.constant 0 : index
    %0 = vector.load %arg2[%c0, %c0_0] : memref<1x1024xf32, #tpu.memory_space<vmem>>, vector<1x1024xf32>
    %1 = vector.shape_cast %0 : vector<1x1024xf32> to vector<1x1024xf32>
    %2 = vector.broadcast %1 : vector<1x1024xf32> to vector<2x1024xf32>
    %c0_1 = arith.constant 0 : index
    %c0_2 = arith.constant 0 : index
    %3 = vector.load %arg3[%c0_1, %c0_2] : memref<2x1024xf32, #tpu.memory_space<vmem>>, vector<2x1024xf32>
    tpu.vector_store %arg3[%c0_1, %c0_2], %2 {strides = array<i32>} : memref<2x1024xf32, #tpu.memory_space<vmem>>, vector<2x1024xf32>,
    return
  }
  func.func @transform_0(%arg0: i32, %arg1: i32) -> (i32, i32) {
    %c0_i32 = arith.constant 0 : i32
    %c0_i32_0 = arith.constant 0 : i32
    return %c0_i32, %arg0 : i32, i32
  }
  func.func @transform_1(%arg0: i32, %arg1: i32) -> (i32, i32) {
    %c0_i32 = arith.constant 0 : i32
    return %arg1, %arg0 : i32, i32
  }
}

</mosaic_0001>

<bundles_post_ra>
// kernel: tpu_custom_call.1
= control target key start
LH: loop header
LB: loop body
LE: loop exit
PB: predicated region body
PF: predicated region fallthrough
CT: control target
= control target key end

     0   :  { %6 = vsyncpa [#allocation3], 0  ;;  %s196_s0 = inlined_call_operand.hbm [shape: f32[1,1024], index: 0, kind: input, shape index: {}]   ;;  %s197_s1 = inlined_call_operand.hbm [shape: f32[2,1024], index: 1, kind: output, shape index: {}]  }
   0x1   :  { %7 = vsyncpa [#allocation4], 0  ;;  %s159_s6 = smov [#allocation2]   ;;  %s111_s10 = scalar_lea.hbm %s196_s0, 128 }
   0x2   :  { %s14_s7 = sshll.u32 %s159_s6, 4  ;;  %p112_p0 = scmp.ne.s32.totalorder %s196_s0, %s111_s10  ;;  %s15_s7 = int_to_ptr.vmem [resolvable:$true] %s14_s7 }
   0x3   :  { %p115_p1 = scmp.lt.u32.totalorder %s111_s10, %s196_s0 }
   0x5   :  { %p117_p2 = pnand %p115_p1, %p112_p0 }
   0x7   :  { %120 = shalt.err (!%p117_p2)
}
   0x8   :  { %s121_s15 = scalar_lea.vmem %s15_s7, 128  ;;  %p126_p4 = scmp.lt.s32.totalorder %s15_s7, %s15_s7 }
   0x9   :  { %p122_p3 = scmp.ne.s32.totalorder %s15_s7, %s121_s15  ;;  %p127_p5 = scmp.lt.s32.totalorder %s121_s15, %s121_s15 }
   0xb   :  { %p128_p6 = por %p127_p5, %p126_p4 }
   0xd   :  { %p129_p7 = pnand %p128_p6, %p122_p3 }
   0xf   :  { %132 = shalt.err (!%p129_p7)
}
  0x10   :  { %17 = dma.hbm_to_vmem [thread:$0]  %s196_s0, 128, %s15_s7, [#allocation3]  }
  0x11   :  { %155 = dma.done.wait [#allocation3], 128  }
  0x12   :  { %156 = vsyncadd [#allocation3], 4294967168  ;;  %v23_v0 = vlaneseq  ;;  %v160_v1 = vmov 1983009808   ;;  %v21_v13 = vld [vmem:[#allocation2] sm:$0xff]  ;;  %s161_s0 = smov [#allocation5]  }
  0x13   :  { %v58_v2 = vunpack.c.l.s4 %v160_v1  ;;  %s99_s18 = sshll.u32 %s161_s0, 4  ;;  %s100_s18 = int_to_ptr.vmem [resolvable:$true] %s99_s18 }
  0x14   :  { %v24_v3 = vshrl.u32 %v23_v0, 7  ;;  %s133_s19 = scalar_lea.vmem %s100_s18, 256  ;;  %p138_p9 = scmp.lt.s32.totalorder %s100_s18, %s100_s18 }
  0x15   :  { %v59_v4 = vunpack.c.0.s8 %v58_v2  ;;  %p134_p8 = scmp.ne.s32.totalorder %s100_s18, %s133_s19  ;;  %p139_p10 = scmp.lt.s32.totalorder %s133_s19, %s133_s19 }
  0x16   :  { %v25_v5 = vsub.s32 0, %v24_v3  ;;  %v29_v6 = vsub.s32 1, %v24_v3  ;;  %v33_v7 = vsub.s32 2, %v24_v3  ;;  %v37_v8 = vsub.s32 3, %v24_v3 }
  0x17   :  { %v41_v9 = vsub.s32 4, %v24_v3  ;;  %v45_v10 = vsub.s32 5, %v24_v3  ;;  %v49_v11 = vsub.s32 6, %v24_v3  ;;  %v53_v12 = vsub.s32 7, %v24_v3  ;;  %p140_p11 = por %p139_p10, %p138_p9 }
  0x18   :  { %v62_v14 = vsub.s32 %v59_v4, %v24_v3  ;;  %v26_v15 = vrot.slane %v21_v13, %v25_v5  ;;  %v30_v16 = vrot.slane %v21_v13, %v29_v6  ;;  %v34_v17 = vrot.slane %v21_v13, %v33_v7 }
  0x19   :  { %v38_v18 = vrot.slane %v21_v13, %v37_v8  ;;  %v42_v19 = vrot.slane %v21_v13, %v41_v9  ;;  %v46_v20 = vrot.slane %v21_v13, %v45_v10  ;;  %v50_v21 = vrot.slane %v21_v13, %v49_v11  ;;  %p141_p12 = pnand %p140_p11, %p134_p8 }
  0x1a   :  { %v54_v22 = vrot.slane %v21_v13, %v53_v12  ;;  %v55_v23 = vcombine.low %v26_v15, %v30_v16 }
  0x1b   :  { %v56_v24 = vcombine.low %v34_v17, %v38_v18  ;;  %v72_v25 = vcombine.low %v42_v19, %v46_v20 }
  0x1c   :  { %v73_v26 = vcombine.low %v50_v21, %v54_v22  ;;  %v63_v27 = vrot.slane %v55_v23, %v62_v14 }
  0x1d   :  { %v70_v28 = vrot.slane %v56_v24, %v62_v14  ;;  %v80_v29 = vrot.slane %v72_v25, %v62_v14 }
  0x1e   :  { %v87_v30 = vrot.slane %v73_v26, %v62_v14 }
  0x1f   :  { %v71_v31 = vcombine.low %v63_v27, %v70_v28 }
  0x20   :  { %v88_v32 = vcombine.low %v80_v29, %v87_v30 }
  0x21   :  { %91 = vst [vmem:[#allocation5] sm:$0xff] %v71_v31 }
  0x22   :  { %92 = vst [vmem:[#allocation5 + $0x8] sm:$0xff] %v88_v32 }
  0x23   :  { %144 = shalt.err (!%p141_p12)
}
  0x24   :  { %s145_s22 = scalar_lea.hbm %s197_s1, 256 }
  0x25   :  { %p146_p13 = scmp.ne.s32.totalorder %s197_s1, %s145_s22  ;;  %p149_p0 = scmp.lt.u32.totalorder %s145_s22, %s197_s1 }
  0x27   :  { %p151_p1 = pnand %p149_p0, %p146_p13 }
  0x29   :  { %154 = shalt.err (!%p151_p1)
}
  0x2a   :  { %102 = dma.vmem_to_hbm [thread:$0]  %s100_s18, 256, %s197_s1, [#allocation4]  }
  0x2b   :  { %157 = dma.done.wait [#allocation4], 256  }
  0x2c   :  { %158 = vsyncadd [#allocation4], 4294967040 }
  0x2d   :  { %106 = vsyncpa [#allocation3], 1 }
  0x2e   :  { %107 = vsyncpa [#allocation4], 1 }

</bundles_post_ra>
